<compile_context>
chip_gen: v7x
topology: tpu7x:2x2x1
jax: 0.10.0
libtpu: 0.0.40
codegen_flags: <defaults>
</compile_context>

<pallas_src>
import jax
import jax.numpy as jnp
from jax.experimental import pallas as pl
from jax.experimental.pallas import tpu as pltpu

IN_DIM = 20
HIDDEN_DIM = 256
OUT_DIM = 10
ROW_ALIGN = 16        # batch-tile row alignment (works for f32 and bf16)
DEFAULT_TB = 2048     # batch tile (rows)


def _round_up(n, m):
    return ((n + m - 1) // m) * m


def mlp_kernel(x_ref, w1_ref, b1_ref, w2_ref, b2_ref, o_ref):
    # Cast the streaming x tile to the MXU operand dtype in-kernel (the VPU
    # pack is hidden under DMA); accumulate in f32 on the MXU.
    x = x_ref[...].astype(w1_ref.dtype)                              # (TB, 20)
    h = jnp.dot(x, w1_ref[...], preferred_element_type=jnp.float32)  # (TB, 256) f32
    h = jnp.maximum(h + b1_ref[...], 0.0)                            # bias + ReLU, f32
    y = jnp.dot(h.astype(w2_ref.dtype), w2_ref[...],
                preferred_element_type=jnp.float32)                  # (TB, 10) f32
    o_ref[...] = (y + b2_ref[...]).astype(o_ref.dtype)               # (TB, 10)


def prepare_params(w1_t, b1, w2_t, b2, *, mxu_dtype=jnp.bfloat16):
    """One-time weight prep (hoisted out of the per-call forward path)."""
    return (w1_t.astype(mxu_dtype),
            b1.astype(jnp.float32),
            w2_t.astype(mxu_dtype),
            b2.astype(jnp.float32))


def _choose_tiling(B, tb):
    # >= 2 tiles when the batch is big enough (lets v7x's 2 TensorCores each
    # take a share); balance tile size across tiles so a batch just above a
    # multiple of tb does not nearly double the padding.
    n_tiles = max(pl.cdiv(B, tb), 2 if B >= 2 * ROW_ALIGN else 1)
    tb_eff = _round_up(pl.cdiv(B, n_tiles), ROW_ALIGN)
    n_tiles = pl.cdiv(B, tb_eff)
    return tb_eff, n_tiles


def mlp_forward(x, params, *, tb=DEFAULT_TB):
    """y = relu(x @ W1 + b1) @ W2 + b2.

    x: (B, 20) f32; params from prepare_params(): W1 (20,256), b1 (1,256),
    W2 (256,10), b2 (1,10) (weights pre-transposed to (in, out)).
    Returns (B, 10) float32.
    """
    w1, b1, w2, b2 = params
    B = x.shape[0]

    tb_eff, n_tiles = _choose_tiling(B, tb)
    B_pad = n_tiles * tb_eff
    if B_pad != B:
        x = jnp.pad(x, ((0, B_pad - B), (0, 0)))   # tail-only zero pad

    out = pl.pallas_call(
        mlp_kernel,
        out_shape=jax.ShapeDtypeStruct((B_pad, OUT_DIM), jnp.float32),
        grid=(n_tiles,),
        in_specs=[
            pl.BlockSpec((tb_eff, IN_DIM), lambda i: (i, 0)),        # x tile (streamed)
            pl.BlockSpec((IN_DIM, HIDDEN_DIM), lambda i: (0, 0)),    # W1 (resident)
            pl.BlockSpec((1, HIDDEN_DIM), lambda i: (0, 0)),         # b1 (resident)
            pl.BlockSpec((HIDDEN_DIM, OUT_DIM), lambda i: (0, 0)),   # W2 (resident)
            pl.BlockSpec((1, OUT_DIM), lambda i: (0, 0)),            # b2 (resident)
        ],
        out_specs=pl.BlockSpec((tb_eff, OUT_DIM), lambda i: (i, 0)),
        compiler_params=pltpu.CompilerParams(
            dimension_semantics=("parallel",),   # shard batch tiles across TCs (v7x)
        ),
    )(x, w1, b1, w2, b2)

    return out if B_pad == B else out[:B]


def init_params(key):
    """Deterministic init mirroring nn.Linear (uniform +/- 1/sqrt(fan_in))."""
    k1, k2, k3, k4 = jax.random.split(key, 4)
    bound1 = 1.0 / jnp.sqrt(IN_DIM)
    bound2 = 1.0 / jnp.sqrt(HIDDEN_DIM)
    # PyTorch stores W as (out, in); we keep the transposed (in, out) layout.
    w1_t = jax.random.uniform(k1, (IN_DIM, HIDDEN_DIM), jnp.float32, -bound1, bound1)
    b1 = jax.random.uniform(k2, (1, HIDDEN_DIM), jnp.float32, -bound1, bound1)
    w2_t = jax.random.uniform(k3, (HIDDEN_DIM, OUT_DIM), jnp.float32, -bound2, bound2)
    b2 = jax.random.uniform(k4, (1, OUT_DIM), jnp.float32, -bound2, bound2)
    return w1_t, b1, w2_t, b2


if __name__ == "__main__":
    key = jax.random.PRNGKey(0)
    k_x, k_p, k_x2 = jax.random.split(key, 3)

    w1_t, b1, w2_t, b2 = init_params(k_p)
    params_bf16 = prepare_params(w1_t, b1, w2_t, b2)                        # default bf16 MXU operands
    params_f32 = prepare_params(w1_t, b1, w2_t, b2, mxu_dtype=jnp.float32)  # bit-parity escape hatch

    # --- small-shape check, f32 MXU path (tight tolerance) ---
    B = 2
    x = jax.random.normal(k_x, (B, IN_DIM), jnp.float32)
    ref = jnp.maximum(x @ w1_t + b1, 0.0) @ w2_t + b2

    out_f32 = jax.block_until_ready(mlp_forward(x, params_f32))
    assert out_f32.shape == (B, OUT_DIM)
    assert jnp.allclose(out_f32, ref, atol=1e-5, rtol=1e-5)

    # --- bf16 MXU-operand path (default), same small batch, looser tolerance ---
    out_bf16 = jax.block_until_ready(mlp_forward(x, params_bf16))
    assert out_bf16.shape == (B, OUT_DIM)
    assert jnp.allclose(out_bf16, ref, atol=5e-2, rtol=5e-2)

    # --- ragged batch to exercise the multi-tile grid path (2 balanced tiles) ---
    B2 = 1000
    x2 = jax.random.normal(k_x2, (B2, IN_DIM), jnp.float32)
    ref2 = jnp.maximum(x2 @ w1_t + b1, 0.0) @ w2_t + b2
    out2 = jax.block_until_ready(mlp_forward(x2, params_bf16))
    assert out2.shape == (B2, OUT_DIM)
    assert jnp.allclose(out2, ref2, atol=5e-2, rtol=5e-2)

    print("KERNEL_OK")
</pallas_src>

<mosaic_0001>
module attributes {stable_mosaic.version = 11 : i64} {
  func.func @mlp_kernel(%arg0: i32, %arg1: memref<16x20xf32, #tpu.memory_space<vmem>>, %arg2: memref<20x256xf32, #tpu.memory_space<vmem>>, %arg3: memref<1x256xf32, #tpu.memory_space<vmem>>, %arg4: memref<256x10xf32, #tpu.memory_space<vmem>>, %arg5: memref<1x10xf32, #tpu.memory_space<vmem>>, %arg6: memref<16x10xf32, #tpu.memory_space<vmem>>) attributes {dimension_semantics = [#tpu.dimension_semantics<parallel>], iteration_bounds = array<i64: 1>, scalar_prefetch = 0 : i64, scratch_operands = 0 : i64, tpu.core_type = #tpu.core_type<tc>, window_params = [{transform_indices = @transform_0, window_bounds = array<i64: 16, 20>}, {pipeline_mode = #tpu.pipeline_mode<synchronous>, transform_indices = @transform_1, window_bounds = array<i64: 20, 256>}, {pipeline_mode = #tpu.pipeline_mode<synchronous>, transform_indices = @transform_2, window_bounds = array<i64: 1, 256>}, {pipeline_mode = #tpu.pipeline_mode<synchronous>, transform_indices = @transform_3, window_bounds = array<i64: 256, 10>}, {pipeline_mode = #tpu.pipeline_mode<synchronous>, transform_indices = @transform_4, window_bounds = array<i64: 1, 10>}, {transform_indices = @transform_5, window_bounds = array<i64: 16, 10>}]} {
    %c0 = arith.constant 0 : index
    %c0_0 = arith.constant 0 : index
    %0 = vector.load %arg1[%c0, %c0_0] : memref<16x20xf32, #tpu.memory_space<vmem>>, vector<16x20xf32>
    %c0_1 = arith.constant 0 : index
    %c0_2 = arith.constant 0 : index
    %1 = vector.load %arg2[%c0_1, %c0_2] : memref<20x256xf32, #tpu.memory_space<vmem>>, vector<20x256xf32>
    %cst = arith.constant dense<0.000000e+00> : vector<16x256xf32>
    %2 = tpu.matmul %0, %1, %cst {dimension_numbers = #tpu.dot_dimension_numbers<[1], [0], [0], [1], [0, 0, 1, 1], [], []>} : vector<16x20xf32>, vector<20x256xf32>, vector<16x256xf32> -> vector<16x256xf32>
    %c0_3 = arith.constant 0 : index
    %c0_4 = arith.constant 0 : index
    %3 = vector.load %arg3[%c0_3, %c0_4] : memref<1x256xf32, #tpu.memory_space<vmem>>, vector<1x256xf32>
    %4 = vector.broadcast %3 : vector<1x256xf32> to vector<16x256xf32>
    %5 = arith.addf %2, %4 : vector<16x256xf32>
    %cst_5 = arith.constant 0.000000e+00 : f32
    %6 = vector.broadcast %cst_5 : f32 to vector<16x256xf32>
    %7 = arith.maximumf %5, %6 : vector<16x256xf32>
    %c0_6 = arith.constant 0 : index
    %c0_7 = arith.constant 0 : index
    %8 = vector.load %arg4[%c0_6, %c0_7] : memref<256x10xf32, #tpu.memory_space<vmem>>, vector<256x10xf32>
    %cst_8 = arith.constant dense<0.000000e+00> : vector<16x10xf32>
    %9 = tpu.matmul %7, %8, %cst_8 {dimension_numbers = #tpu.dot_dimension_numbers<[1], [0], [0], [1], [0, 0, 1, 1], [], []>} : vector<16x256xf32>, vector<256x10xf32>, vector<16x10xf32> -> vector<16x10xf32>
    %c0_9 = arith.constant 0 : index
    %c0_10 = arith.constant 0 : index
    %10 = vector.load %arg5[%c0_9, %c0_10] : memref<1x10xf32, #tpu.memory_space<vmem>>, vector<1x10xf32>
    %11 = vector.broadcast %10 : vector<1x10xf32> to vector<16x10xf32>
    %12 = arith.addf %9, %11 : vector<16x10xf32>
    %c0_11 = arith.constant 0 : index
    %c0_12 = arith.constant 0 : index
    %13 = vector.load %arg6[%c0_11, %c0_12] : memref<16x10xf32, #tpu.memory_space<vmem>>, vector<16x10xf32>
    tpu.vector_store %arg6[%c0_11, %c0_12], %12 {strides = array<i32>} : memref<16x10xf32, #tpu.memory_space<vmem>>, vector<16x10xf32>,
    return
  }
  func.func @transform_0(%arg0: i32) -> (i32, i32) {
    %c0_i32 = arith.constant 0 : i32
    %c0_i32_0 = arith.constant 0 : i32
    return %arg0, %c0_i32 : i32, i32
  }
  func.func @transform_1(%arg0: i32) -> (i32, i32) {
    %c0_i32 = arith.constant 0 : i32
    %c0_i32_0 = arith.constant 0 : i32
    %c0_i32_1 = arith.constant 0 : i32
    return %c0_i32, %c0_i32_0 : i32, i32
  }
  func.func @transform_2(%arg0: i32) -> (i32, i32) {
    %c0_i32 = arith.constant 0 : i32
    %c0_i32_0 = arith.constant 0 : i32
    %c0_i32_1 = arith.constant 0 : i32
    return %c0_i32, %c0_i32_0 : i32, i32
  }
  func.func @transform_3(%arg0: i32) -> (i32, i32) {
    %c0_i32 = arith.constant 0 : i32
    %c0_i32_0 = arith.constant 0 : i32
    %c0_i32_1 = arith.constant 0 : i32
    return %c0_i32, %c0_i32_0 : i32, i32
  }
  func.func @transform_4(%arg0: i32) -> (i32, i32) {
    %c0_i32 = arith.constant 0 : i32
    %c0_i32_0 = arith.constant 0 : i32
    %c0_i32_1 = arith.constant 0 : i32
    return %c0_i32, %c0_i32_0 : i32, i32
  }
  func.func @transform_5(%arg0: i32) -> (i32, i32) {
    %c0_i32 = arith.constant 0 : i32
    %c0_i32_0 = arith.constant 0 : i32
    return %arg0, %c0_i32 : i32, i32
  }
}

</mosaic_0001>

<bundles_post_ra>
// kernel: tpu_custom_call.1
= control target key start
LH: loop header
LB: loop body
LE: loop exit
PB: predicated region body
PF: predicated region fallthrough
CT: control target
= control target key end

     0   :  { %v376_v5 = vmov 0.0   ;;  %vm48_vm0 = vcmask 1043456   ;;  %vm41_vm1 = vcmask 162816   ;;  %s552_s0 = inlined_call_operand.vmem [shape: f32[16,20], index: 0, kind: input, shape index: {}]   ;;  %s553_s1 = inlined_call_operand.vmem [shape: f32[20,256], index: 1, kind: input, shape index: {}]   ;;  %s554_s2 = inlined_call_operand.vmem [shape: f32[1,256], index: 2, kind: input, shape index: {}]   ;;  %s555_s3 = inlined_call_operand.vmem [shape: f32[256,10], index: 3, kind: input, shape index: {}]   ;;  %s556_s4 = inlined_call_operand.vmem [shape: f32[1,10], index: 4, kind: input, shape index: {}]   ;;  %s557_s5 = inlined_call_operand.hbm [shape: f32[16,10], index: 5, kind: output, shape index: {}]  }
   0x1   :  { %v24_v0 = vld [vmem:[%s553_s1 + $0x8] sm:$0xff]  ;;  %v26_v1 = vld [vmem:[%s553_s1 + $0x18] sm:$0xff]  ;;  %v23_v2 = vld [vmem:[%s553_s1] sm:$0xff]  ;;  %119 = vmatprep.mubr.f32.mxu0 %v376_v5 }
   0x2   :  { %v312_v3 = vpack.c.bf16 %v26_v1, %v24_v0  ;;  %v25_v4 = vld [vmem:[%s553_s1 + $0x10] sm:$0xff]  ;;  %v28_v7 = vld [vmem:[%s553_s1 + $0x28] sm:$0xf]  ;;  %v152_v8 = vld [vmem:[%s555_s3 + $0x80] sm:$0xff] }
   0x3   :  { %v314_v6 = vpack.c.bf16 %v25_v4, %v23_v2  ;;  %v27_v9 = vld [vmem:[%s553_s1 + $0x20] sm:$0xf]  ;;  %v153_v10 = vld [vmem:[%s555_s3 + $0x88] sm:$0xff]  ;;  %v154_v15 = vld [vmem:[%s555_s3 + $0x90] sm:$0xff] }
   0x4   :  { %313 = vmatprep.subr.bf16.mxu0 %v312_v3  ;;  %v136_v11 = vld [vmem:[%s555_s3] sm:$0xff]  ;;  %v137_v12 = vld [vmem:[%s555_s3 + $0x8] sm:$0xff]  ;;  %v316_v13 = vpack.c.bf16 %v153_v10, %v152_v8  ;;  %v155_v16 = vld [vmem:[%s555_s3 + $0x98] sm:$0xff] }
   0x5   :  { %315 = vmatpush1.bf16.msra.mxu0 %v314_v6  ;;  %v318_v14 = vpack.c.bf16 %v137_v12, %v136_v11  ;;  %v138_v17 = vld [vmem:[%s555_s3 + $0x10] sm:$0xff]  ;;  %v320_v18 = vpack.c.bf16 %v155_v16, %v154_v15  ;;  %v139_v19 = vld [vmem:[%s555_s3 + $0x18] sm:$0xff]  ;;  %v156_v20 = vld [vmem:[%s555_s3 + $0xa0] sm:$0xff] }
   0x6   :  { %269 = vmatprep.subr.msk.mxu0 %vm48_vm0, %v28_v7  ;;  %v157_v21 = vld [vmem:[%s555_s3 + $0xa8] sm:$0xff]  ;;  %v21_v22 = vld [vmem:[%s552_s0] sm:$0xff]  ;;  %317 = vmatprep.subr.bf16.mxu1 %v316_v13  ;;  %v322_v23 = vpack.c.bf16 %v139_v19, %v138_v17  ;;  %v158_v27 = vld [vmem:[%s555_s3 + $0xb0] sm:$0xff] }
   0x7   :  { %319 = vmatpush3.bf16.msra.mxu1 %v318_v14  ;;  %v324_v24 = vpack.c.bf16 %v157_v21, %v156_v20  ;;  %v140_v25 = vld [vmem:[%s555_s3 + $0x20] sm:$0xff]  ;;  %v141_v26 = vld [vmem:[%s555_s3 + $0x28] sm:$0xff]  ;;  %v159_v28 = vld [vmem:[%s555_s3 + $0xb8] sm:$0xff] }
   0x8   :  { %321 = vmatprep.subr.bf16.mxu1 %v320_v18  ;;  %v22_v29 = vld [vmem:[%s552_s0 + $0x8] sm:$0xff]  ;;  %v326_v30 = vpack.c.bf16 %v141_v26, %v140_v25 }
   0x9   :  { %270 = vmatpush1.msk.msra.mxu0 %vm48_vm0, %v27_v9 }
   0xa   :  { %271 = vmatmul.mubr.msk.f32.vlgmr.msra.gmra.mrb[0].mxu0 %vm41_vm1, %v21_v22 }
   0xb   :  { %125 = vmatprep.mubr.f32.mxu0 %v376_v5  ;;  %323 = vmatpush3.bf16.msra.mxu1 %v322_v23 }
   0xc   :  { %10 = vsyncpa [#allocation3], 0  ;;  %325 = vmatprep.subr.bf16.mxu1 %v324_v24  ;;  %v328_v31 = vpack.c.bf16 %v159_v28, %v158_v27  ;;  %v142_v32 = vld [vmem:[%s555_s3 + $0x30] sm:$0xff]  ;;  %v143_v33 = vld [vmem:[%s555_s3 + $0x38] sm:$0xff]  ;;  %v31_v59 = vlaneseq  ;;  %vm250_vm2 = vcmask 80896   ;;  %s377_s20 = smov [#allocation2]  }
   0xd   :  { %v160_v34 = vld [vmem:[%s555_s3 + $0xc0] sm:$0xff]  ;;  %v161_v35 = vld [vmem:[%s555_s3 + $0xc8] sm:$0xff]  ;;  %v330_v36 = vpack.c.bf16 %v143_v33, %v142_v32  ;;  %v162_v40 = vld [vmem:[%s555_s3 + $0xd0] sm:$0xff]  ;;  %s258_s21 = sshll.u32 %s377_s20, 4  ;;  %s259_s21 = int_to_ptr.vmem [resolvable:$true] %s258_s21 }
   0xe   :  { %272 = vmatmul.mubr.msk.f32.gmra.mrb[2].mxu0 %vm41_vm1, %v22_v29  ;;  %v332_v37 = vpack.c.bf16 %v161_v35, %v160_v34  ;;  %v144_v38 = vld [vmem:[%s555_s3 + $0x40] sm:$0xff]  ;;  %v145_v39 = vld [vmem:[%s555_s3 + $0x48] sm:$0xff]  ;;  %v163_v41 = vld [vmem:[%s555_s3 + $0xd8] sm:$0xff]  ;;  %v32_v60 = vshrl.u32 %v31_v59, 7  ;;  %s352_s22 = scalar_lea.vmem %s259_s21, 256  ;;  %p357_p1 = scmp.lt.s32.totalorder %s259_s21, %s259_s21 }
   0xf   :  { %327 = vmatpush3.bf16.msra.mxu1 %v326_v30  ;;  %v334_v42 = vpack.c.bf16 %v145_v39, %v144_v38  ;;  %v336_v43 = vpack.c.bf16 %v163_v41, %v162_v40  ;;  %v146_v44 = vld [vmem:[%s555_s3 + $0x50] sm:$0xff]  ;;  %v147_v45 = vld [vmem:[%s555_s3 + $0x58] sm:$0xff]  ;;  %v164_v46 = vld [vmem:[%s555_s3 + $0xe0] sm:$0xff]  ;;  %p353_p0 = scmp.ne.s32.totalorder %s259_s21, %s352_s22  ;;  %p358_p2 = scmp.lt.s32.totalorder %s352_s22, %s352_s22 }
  0x10   :  { %329 = vmatprep.subr.bf16.mxu1 %v328_v31  ;;  %v165_v47 = vld [vmem:[%s555_s3 + $0xe8] sm:$0xff]  ;;  %v338_v48 = vpack.c.bf16 %v147_v45, %v146_v44  ;;  %v148_v50 = vld [vmem:[%s555_s3 + $0x60] sm:$0xff]  ;;  %v166_v53 = vld [vmem:[%s555_s3 + $0xf0] sm:$0xff]  ;;  %v33_v61 = vsub.s32 0, %v32_v60  ;;  %v37_v63 = vsub.s32 1, %v32_v60 }
  0x11   :  { %v340_v49 = vpack.c.bf16 %v165_v47, %v164_v46  ;;  %v149_v51 = vld [vmem:[%s555_s3 + $0x68] sm:$0xff]  ;;  %v167_v54 = vld [vmem:[%s555_s3 + $0xf8] sm:$0xff]  ;;  %v150_v56 = vld [vmem:[%s555_s3 + $0x70] sm:$0xff]  ;;  %p359_p3 = por %p358_p2, %p357_p1 }
  0x12   :  { %v342_v52 = vpack.c.bf16 %v149_v51, %v148_v50  ;;  %v344_v55 = vpack.c.bf16 %v167_v54, %v166_v53  ;;  %v151_v57 = vld [vmem:[%s555_s3 + $0x78] sm:$0xff]  ;;  %v29_v62 = vld [vmem:[%s554_s2] sm:$0x3] }
  0x13   :  { %331 = vmatpush3.bf16.msra.mxu1 %v330_v36  ;;  %v346_v58 = vpack.c.bf16 %v151_v57, %v150_v56  ;;  %v34_v0 = vrot.slane %v29_v62, %v33_v61  ;;  %v38_v1 = vrot.slane %v29_v62, %v37_v63  ;;  %v273_v15 = vld [vmem:[%s556_s4] ss:$0 sm:$0xff]  ;;  %p360_p4 = pnand %p359_p3, %p353_p0 }
  0x14   :  { %333 = vmatprep.subr.bf16.mxu1 %v332_v37 }
  0x17   :  { %335 = vmatpush3.bf16.msra.mxu1 %v334_v42 }
  0x18   :  { %337 = vmatprep.subr.bf16.mxu1 %v336_v43 }
  0x1b   :  { %339 = vmatpush3.bf16.msra.mxu1 %v338_v48 }
  0x1c   :  { %341 = vmatprep.subr.bf16.mxu1 %v340_v49 }
  0x1f   :  { %343 = vmatpush3.bf16.msra.mxu1 %v342_v52 }
  0x20   :  { %345 = vmatprep.subr.bf16.mxu1 %v344_v55 }
  0x23   :  { %347 = vmatpush3.bf16.msra.mxu1 %v346_v58 }
  0xdd   :  { %v121_v2 = vpop.f32.mrb[0].mxu0 }
  0xde   :  { %v122_v3 = vadd.f32 %v121_v2, %v34_v0  ;;  %v123_v4 = vpop.f32.mrb[1].mxu0 }
  0xdf   :  { %v124_v5 = vadd.f32 %v123_v4, %v38_v1 }
  0xe0   :  { %v132_v8 = vmax.f32 %v122_v3, 0.0 }
  0xe1   :  { %v127_v6 = vpop.f32.mrb[2].mxu0  ;;  %v133_v7 = vmax.f32 %v124_v5, 0.0 }
  0xe2   :  { %v128_v9 = vadd.f32 %v127_v6, %v34_v0  ;;  %v129_v10 = vpop.f32.mrb[3].mxu0 }
  0xe3   :  { %v130_v11 = vadd.f32 %v129_v10, %v38_v1  ;;  %239 = vmatprep.mubr.f32.mxu1 %v133_v7 }
  0xe4   :  { %240 = vmatmul.mubr.f32.vlgmr.msra.gmra.mrb[0].mxu1 %v132_v8  ;;  %v134_v13 = vmax.f32 %v128_v9, 0.0 }
  0xe5   :  { %v135_v12 = vmax.f32 %v130_v11, 0.0 }
  0xe7   :  { %244 = vmatprep.mubr.f32.mxu1 %v135_v12 }
  0xe8   :  { %245 = vmatmul.mubr.f32.gmra.mrb[2].mxu1 %v134_v13 }
 0x1b7   :  { %v306_v14 = vpop.f32.mrb[0].mxu1 }
 0x1b8   :  { %v307_v16 = vpop.f32.mrb[1].mxu1 }
 0x1b9   :  { %v308_v17 = vadd.f32 %v307_v16, %v306_v14 }
 0x1bb   :  { %v242_v18 = vadd.f32 %v308_v17, %v273_v15  ;;  %v309_v19 = vpop.f32.mrb[2].mxu1 }
 0x1bc   :  { %v310_v20 = vpop.f32.mrb[3].mxu1 }
 0x1bd   :  { %251 = vst.msk [vmem:[#allocation2] sm:$0xff] %vm250_vm2, %v242_v18  ;;  %v311_v21 = vadd.f32 %v310_v20, %v309_v19 }
 0x1bf   :  { %v247_v22 = vadd.f32 %v311_v21, %v273_v15 }
 0x1c1   :  { %252 = vst.msk [vmem:[#allocation2 + $0x8] sm:$0xff] %vm250_vm2, %v247_v22 }
 0x1c2   :  { %363 = shalt.err (!%p360_p4)
}
 0x1c3   :  { %s364_s24 = scalar_lea.hbm %s557_s5, 256 }
 0x1c4   :  { %p365_p5 = scmp.ne.s32.totalorder %s557_s5, %s364_s24  ;;  %p368_p6 = scmp.lt.u32.totalorder %s364_s24, %s557_s5 }
 0x1c6   :  { %p370_p7 = pnand %p368_p6, %p365_p5 }
 0x1c8   :  { %373 = shalt.err (!%p370_p7)
}
 0x1c9   :  { %s378_s29 = smov 128   ;;  %s379_s30 = smov 8  }
 0x1ca   :  { %264 = dma.vmem_to_hbm [thread:$0]  %s259_s21, 256, %s557_s5, [#allocation3], %s378_s29, %s378_s29, %s379_s30  }
 0x1cb   :  { %374 = dma.done.wait [#allocation3], 256  }
 0x1cc   :  { %375 = vsyncadd [#allocation3], 4294967040 }
 0x1cd   :  { %268 = vsyncpa [#allocation3], 1 }

</bundles_post_ra>
